<compile_context>
chip_gen: v7x
topology: tpu7x:2x2x1
jax: 0.10.0
libtpu: 0.0.40
codegen_flags: <defaults>
</compile_context>

<pallas_src>
import functools

import jax
import jax.numpy as jnp
from jax.experimental import pallas as pl
from jax.experimental.pallas import tpu as pltpu


def _conv_stats_kernel(p_ref, w_ref, sum_ref, sq_ref, *, nb):
    """Single-contraction conv + per-batch-block channel statistics.

      p_ref   : (Nb, K, Ho*Wo)   bf16   im2col slab (lane-dense, built in wrapper)
      w_ref   : (Cout, K)        bf16   folded conv weight
      sum_ref : (Nb, 1, Cout)    f32    per-batch partial sum over spatial
      sq_ref  : (Nb, 1, Cout)    f32    per-batch partial sum of squares
    """
    w = w_ref[...]
    for b in range(nb):  # nb is a small static int; unrolled at trace time
        acc = jnp.dot(w, p_ref[b], preferred_element_type=jnp.float32)  # (Cout, HW) f32
        sum_ref[b] = jnp.sum(acc, axis=1).reshape(1, -1)
        sq_ref[b] = jnp.sum(acc * acc, axis=1).reshape(1, -1)


def _conv_bn_relu_kernel(p_ref, w_ref, scale_ref, shift_ref, o_ref, *, nb):
    """Recompute the cheap conv (one MXU dot) and apply BN + ReLU in f32.

      p_ref     : (Nb, K, Ho*Wo)    bf16
      w_ref     : (Cout, K)         bf16
      scale_ref : (1, Cout, 1)      f32
      shift_ref : (1, Cout, 1)      f32
      o_ref     : (Nb, Cout, Ho*Wo) f32   (spatial last dim -> full-width vst)
    """
    w = w_ref[...]
    scale = scale_ref[0]  # (Cout, 1)
    shift = shift_ref[0]  # (Cout, 1)
    for b in range(nb):
        acc = jnp.dot(w, p_ref[b], preferred_element_type=jnp.float32)  # (Cout, HW)
        o_ref[b] = jnp.maximum(acc * scale + shift, 0.0)


def _pick_batch_block(n, per_batch_bytes):
    """Largest divisor Nb of N under a small VMEM budget, keeping >= 2 grid steps."""
    budget = 8 * 1024 * 1024  # well under the default scoped-VMEM limit
    cap = max(1, budget // max(per_batch_bytes, 1))
    best = 1
    for nb in range(1, n + 1):
        if n % nb or nb > cap:
            continue
        if n >= 2 and n // nb < 2:  # keep both v7x TensorCores busy
            continue
        best = nb
    return best


def block2d_forward(x_nchw, conv_w, conv_b, gamma, beta, *,
                    stride=1, padding=0, eps=1e-5):
    n, cin, h, w = x_nchw.shape
    cout, _, kh, kw = conv_w.shape
    ho = (h + 2 * padding - kh) // stride + 1
    wo = (w + 2 * padding - kw) // stride + 1
    hw = ho * wo
    k = kh * kw * cin

    # ---- wrapper-side layout plumbing (all XLA, outside the kernels) --------
    # bf16 MXU operands; spatial zero-pad applied once.
    xp = jnp.pad(x_nchw.astype(jnp.bfloat16),
                 ((0, 0), (0, 0), (padding, padding), (padding, padding)))

    # im2col slab (N, KH*KW*Cin, Ho*Wo): tap-major then Cin along the contraction
    # axis; spatial positions lane-dense on the last axis.  Any stride > 1 is
    # resolved here, so the kernels only see contiguous lane access.
    taps = []
    for i in range(kh):
        for j in range(kw):
            taps.append(jax.lax.slice(
                xp, (0, 0, i, j),
                (n, cin, i + (ho - 1) * stride + 1, j + (wo - 1) * stride + 1),
                (1, 1, stride, stride)))
    patches = jnp.stack(taps, axis=1).reshape(n, k, hw)  # (N, K, HW) bf16

    # OIHW -> (Cout, KH*KW*Cin), tap-major then Cin (matches the patch slab).
    w2 = jnp.transpose(conv_w, (0, 2, 3, 1)).reshape(cout, k).astype(jnp.bfloat16)

    # Conv bias cancels exactly under train-mode BatchNorm (mean subtraction).
    del conv_b

    # ---- batch blocking: amortize per-step overhead, keep >= 2 grid steps ---
    per_batch_bytes = 2 * (k * hw * 2 + cout * hw * 4 + 2 * cout * 4)  # 2x = double buffer
    nb = _pick_batch_block(n, per_batch_bytes)
    steps = n // nb

    # ---- pass 1: conv + batch statistics (no intermediate y materialized) ---
    stats_kernel = functools.partial(_conv_stats_kernel, nb=nb)
    s, sq = pl.pallas_call(
        stats_kernel,
        out_shape=(jax.ShapeDtypeStruct((n, 1, cout), jnp.float32),
                   jax.ShapeDtypeStruct((n, 1, cout), jnp.float32)),
        grid_spec=pltpu.PrefetchScalarGridSpec(
            num_scalar_prefetch=0,
            grid=(steps,),
            in_specs=[pl.BlockSpec((nb, k, hw), lambda i: (i, 0, 0)),
                      pl.BlockSpec((cout, k), lambda i: (0, 0))],
            out_specs=(pl.BlockSpec((nb, 1, cout), lambda i: (i, 0, 0)),
                       pl.BlockSpec((nb, 1, cout), lambda i: (i, 0, 0)))),
        compiler_params=pltpu.CompilerParams(
            dimension_semantics=("parallel",)),
    )(patches, w2)

    # BatchNorm2d training-mode batch statistics (biased variance), tiny glue.
    count = jnp.float32(n * hw)
    mean = jnp.sum(s, axis=(0, 1)) / count                    # (Cout,)
    var = jnp.sum(sq, axis=(0, 1)) / count - mean * mean      # (Cout,) biased
    var = jnp.maximum(var, 0.0)  # guard E[y^2]-E[y]^2 cancellation
    g = gamma.astype(jnp.float32)
    b = beta.astype(jnp.float32)
    inv_std = jax.lax.rsqrt(var + eps)
    scale = (g * inv_std).reshape(1, cout, 1)
    shift = (b - mean * g * inv_std).reshape(1, cout, 1)

    # ---- pass 2: recompute conv (trivial FLOPs) + fused BN + ReLU -----------
    bn_kernel = functools.partial(_conv_bn_relu_kernel, nb=nb)
    out = pl.pallas_call(
        bn_kernel,
        out_shape=jax.ShapeDtypeStruct((n, cout, hw), jnp.float32),
        grid_spec=pltpu.PrefetchScalarGridSpec(
            num_scalar_prefetch=0,
            grid=(steps,),
            in_specs=[pl.BlockSpec((nb, k, hw), lambda i: (i, 0, 0)),
                      pl.BlockSpec((cout, k), lambda i: (0, 0)),
                      pl.BlockSpec((1, cout, 1), lambda i: (0, 0, 0)),
                      pl.BlockSpec((1, cout, 1), lambda i: (0, 0, 0))],
            out_specs=pl.BlockSpec((nb, cout, hw), lambda i: (i, 0, 0))),
        compiler_params=pltpu.CompilerParams(
            dimension_semantics=("parallel",)),
    )(patches, w2, scale, shift)

    # (N, Cout, Ho*Wo) is already NCHW-flattened: trivial reshape, no transpose.
    return out.reshape(n, cout, ho, wo)


def _reference(x_nchw, conv_w, conv_b, gamma, beta, *, stride, padding,
               eps=1e-5):
    cout = conv_w.shape[0]
    y = jax.lax.conv_general_dilated(
        x_nchw, conv_w, window_strides=(stride, stride),
        padding=((padding, padding), (padding, padding)),
        dimension_numbers=("NCHW", "OIHW", "NCHW"),
        precision=jax.lax.Precision.HIGHEST)
    y = y + conv_b.reshape(1, cout, 1, 1)
    mean = jnp.mean(y, axis=(0, 2, 3), keepdims=True)
    var = jnp.var(y, axis=(0, 2, 3), keepdims=True)  # biased, as in BN train
    yn = (y - mean) * jax.lax.rsqrt(var + eps)
    yn = yn * gamma.reshape(1, cout, 1, 1) + beta.reshape(1, cout, 1, 1)
    return jnp.maximum(yn, 0.0)


if __name__ == "__main__":
    key = jax.random.PRNGKey(0)
    k1, k2, k3, k4, k5 = jax.random.split(key, 5)

    N, CIN, H, W = 2, 4, 16, 16
    COUT, KH, KW = 8, 3, 3
    STRIDE, PAD = 1, 1

    x = jax.random.normal(k1, (N, CIN, H, W), dtype=jnp.float32)
    conv_w = 0.1 * jax.random.normal(k2, (COUT, CIN, KH, KW), dtype=jnp.float32)
    conv_b = 0.1 * jax.random.normal(k3, (COUT,), dtype=jnp.float32)
    gamma = 1.0 + 0.1 * jax.random.normal(k4, (COUT,), dtype=jnp.float32)
    beta = 0.1 * jax.random.normal(k5, (COUT,), dtype=jnp.float32)

    out = block2d_forward(x, conv_w, conv_b, gamma, beta,
                          stride=STRIDE, padding=PAD)
    out = jax.block_until_ready(out)

    ref = _reference(x, conv_w, conv_b, gamma, beta,
                     stride=STRIDE, padding=PAD)
    ref = jax.block_until_ready(ref)

    assert out.shape == ref.shape == (N, COUT, H, W), (out.shape, ref.shape)
    # Tolerance accounts for bf16 MXU operands vs. the f32 HIGHEST reference.
    assert jnp.allclose(out, ref, atol=2e-2, rtol=2e-2), (
        float(jnp.max(jnp.abs(out - ref))))

    print("KERNEL_OK")
</pallas_src>

<mosaic_0001>
module attributes {stable_mosaic.version = 11 : i64} {
  func.func @_conv_stats_kernel(%arg0: i32, %arg1: memref<1x36x256xbf16, #tpu.memory_space<vmem>>, %arg2: memref<8x36xbf16, #tpu.memory_space<vmem>>, %arg3: memref<1x1x8xf32, #tpu.memory_space<vmem>>, %arg4: memref<1x1x8xf32, #tpu.memory_space<vmem>>) attributes {dimension_semantics = [#tpu.dimension_semantics<parallel>], iteration_bounds = array<i64: 2>, scalar_prefetch = 0 : i64, scratch_operands = 0 : i64, tpu.core_type = #tpu.core_type<tc>, window_params = [{transform_indices = @transform_0, window_bounds = array<i64: 1, 36, 256>}, {pipeline_mode = #tpu.pipeline_mode<synchronous>, transform_indices = @transform_1, window_bounds = array<i64: 8, 36>}, {transform_indices = @transform_2, window_bounds = array<i64: 1, 1, 8>}, {transform_indices = @transform_3, window_bounds = array<i64: 1, 1, 8>}]} {
    %c0 = arith.constant 0 : index
    %c0_0 = arith.constant 0 : index
    %0 = vector.load %arg2[%c0, %c0_0] : memref<8x36xbf16, #tpu.memory_space<vmem>>, vector<8x36xbf16>
    %c0_1 = arith.constant 0 : index
    %c0_2 = arith.constant 0 : index
    %c0_3 = arith.constant 0 : index
    %1 = vector.load %arg1[%c0_1, %c0_2, %c0_3] : memref<1x36x256xbf16, #tpu.memory_space<vmem>>, vector<1x36x256xbf16>
    %2 = vector.shape_cast %1 : vector<1x36x256xbf16> to vector<36x256xbf16>
    %cst = arith.constant dense<0.000000e+00> : vector<8x256xf32>
    %3 = tpu.matmul %0, %2, %cst {dimension_numbers = #tpu.dot_dimension_numbers<[1], [0], [0], [1], [0, 0, 1, 1], [], []>} : vector<8x36xbf16>, vector<36x256xbf16>, vector<8x256xf32> -> vector<8x256xf32>
    %cst_4 = arith.constant dense<0.000000e+00> : vector<8xf32>
    %4 = vector.multi_reduction <add>, %3, %cst_4 [1] : vector<8x256xf32> to vector<8xf32>
    %5 = vector.shape_cast %4 : vector<8xf32> to vector<1x8xf32>
    %c0_5 = arith.constant 0 : index
    %c0_6 = arith.constant 0 : index
    %c0_7 = arith.constant 0 : index
    %6 = vector.load %arg3[%c0_5, %c0_6, %c0_7] : memref<1x1x8xf32, #tpu.memory_space<vmem>>, vector<1x1x8xf32>
    %7 = vector.shape_cast %6 : vector<1x1x8xf32> to vector<1x8xf32>
    %8 = vector.shape_cast %5 : vector<1x8xf32> to vector<1x1x8xf32>
    tpu.vector_store %arg3[%c0_5, %c0_6, %c0_7], %8 {strides = array<i32>} : memref<1x1x8xf32, #tpu.memory_space<vmem>>, vector<1x1x8xf32>,
    %9 = arith.mulf %3, %3 : vector<8x256xf32>
    %cst_8 = arith.constant dense<0.000000e+00> : vector<8xf32>
    %10 = vector.multi_reduction <add>, %9, %cst_8 [1] : vector<8x256xf32> to vector<8xf32>
    %11 = vector.shape_cast %10 : vector<8xf32> to vector<1x8xf32>
    %c0_9 = arith.constant 0 : index
    %c0_10 = arith.constant 0 : index
    %c0_11 = arith.constant 0 : index
    %12 = vector.load %arg4[%c0_9, %c0_10, %c0_11] : memref<1x1x8xf32, #tpu.memory_space<vmem>>, vector<1x1x8xf32>
    %13 = vector.shape_cast %12 : vector<1x1x8xf32> to vector<1x8xf32>
    %14 = vector.shape_cast %11 : vector<1x8xf32> to vector<1x1x8xf32>
    tpu.vector_store %arg4[%c0_9, %c0_10, %c0_11], %14 {strides = array<i32>} : memref<1x1x8xf32, #tpu.memory_space<vmem>>, vector<1x1x8xf32>,
    return
  }
  func.func @transform_0(%arg0: i32) -> (i32, i32, i32) {
    %c0_i32 = arith.constant 0 : i32
    %c0_i32_0 = arith.constant 0 : i32
    %c0_i32_1 = arith.constant 0 : i32
    return %arg0, %c0_i32, %c0_i32_0 : i32, i32, i32
  }
  func.func @transform_1(%arg0: i32) -> (i32, i32) {
    %c0_i32 = arith.constant 0 : i32
    %c0_i32_0 = arith.constant 0 : i32
    %c0_i32_1 = arith.constant 0 : i32
    return %c0_i32, %c0_i32_0 : i32, i32
  }
  func.func @transform_2(%arg0: i32) -> (i32, i32, i32) {
    %c0_i32 = arith.constant 0 : i32
    %c0_i32_0 = arith.constant 0 : i32
    %c0_i32_1 = arith.constant 0 : i32
    return %arg0, %c0_i32, %c0_i32_0 : i32, i32, i32
  }
  func.func @transform_3(%arg0: i32) -> (i32, i32, i32) {
    %c0_i32 = arith.constant 0 : i32
    %c0_i32_0 = arith.constant 0 : i32
    %c0_i32_1 = arith.constant 0 : i32
    return %arg0, %c0_i32, %c0_i32_0 : i32, i32, i32
  }
}

</mosaic_0001>

<bundles_post_ra>
// kernel: tpu_custom_call.1
= control target key start
LH: loop header
LB: loop body
LE: loop exit
PB: predicated region body
PF: predicated region fallthrough
CT: control target
= control target key end

     0   :  { %9 = vsyncpa [#allocation3], 0  ;;  %s740_s0 = inlined_call_operand.vmem [shape: bf16[2,36,256], index: 0, kind: input, shape index: {}]   ;;  %s741_s1 = inlined_call_operand.vmem [shape: bf16[8,36], index: 1, kind: input, shape index: {}]   ;;  %s742_s2 = inlined_call_operand.hbm [shape: f32[2,1,8], index: 2, kind: output, shape index: {0}]   ;;  %s743_s3 = inlined_call_operand.hbm [shape: f32[2,1,8], index: 3, kind: output, shape index: {1}]  }
   0x1   :  { %11 = vsyncpa [#allocation3 + $0x1], 0 }
   0x2   :  { %12 = vsyncpa [#allocation5], 0 }
   0x3   :  { %14 = vsyncpa [#allocation5 + $0x1], 0  ;;  %s590_s12 = smov 0   ;;  %s592_s13 = smov 0  }
   0x4   :  { %s594_s14 = smov 0   ;;  %s596_s15 = smov 0  }
   0x5 LB: > { %s611_s16 = sadd.s32 4294967295, %s565_s15   ;;  %s400_s17 = sadd.s32 4294967294, %s565_s15   ;;  %s565_s15 = sphi %s596_s15, %s749_s15   ;;  %s561_s14 = sphi %s594_s14, %s748_s14   ;;  %s557_s13 = sphi %s592_s13, %s747_s13   ;;  %s553_s12 = sphi %s590_s12, %s746_s12  }
   0x6   : > { %s615_s18 = sadd.s32 1, %s565_s15   ;;  %s74_s19 = sadd.s32 1, %s561_s14 }
   0x7   : > { %s71_s20 = ssub.s32 %s565_s15, %s615_s18  ;;  %p84_p0 = scmp.ne.s32.totalorder %s561_s14, %s557_s13 }
   0x8   : > { %p72_p1 = scmp.eq.s32.totalorder %s71_s20, 0  ;;  %p85_p2 = scmp.eq.s32.totalorder %s611_s16, 1 }
   0x9   : > { %p90_p3 = scmp.ne.s32.totalorder %s557_s13, %s553_s12  ;;  %p91_p4 = scmp.eq.s32.totalorder %s400_s17, 1 }
   0xa   : > { %s626_s21 = scalar_select %p72_p1, %s561_s14, %s74_s19  }
   0xb   : > { %p628_p5 = por %p85_p2, %p84_p0  ;;  %p632_p6 = por %p91_p4, %p90_p3 }
   0xc   : > { %p403_p7 = scmp.ge.s32.totalorder %s565_s15, 1  ;;  %p146_p8 = scmp.lt.s32.totalorder %s565_s15, 3 }
   0xe   : > { %p147_p9 = pnand %p403_p7, %p146_p8 }
   0xf   : > { %p173_p10 = scmp.lt.s32.totalorder (!%p147_p9), %s611_s16, 1  ;;  %v567_v0 = vmov (!%p147_p9), 0   ;;  %vm214_vm0 = vcmask (!%p147_p9), 1041408   ;;  %v179_v9 = vld [vmem:[%s741_s1] sm:$0xf] (!%p147_p9)  ;;  %vm210_vm1 = vcmask (!%p147_p9), 293888   ;;  %v266_v18 = vlaneseq (!%p147_p9) }
  0x10   : > { %150 = sbr.rel (%p147_p9) target bundleno = 438 (0x1b6), region = 28  ;;  %253 = vmatprep.mubr.bf16.mxu0 (!%p147_p9), %v567_v0  ;;  %s647_s4 = sand.u32 (!%p147_p9), 1, %s557_s13   ;;  %vm273_vm2 = vcmask (!%p147_p9), 57344  }
  0x11   : > { %v267_v19 = vand.u32 (!%p147_p9), 127, %v266_v18  ;;  %v269_v20 = vshrl.u32 (!%p147_p9), %v266_v18, 7  ;;  %s413_s5 = sshll.u32 (!%p147_p9), %s611_s16, 4  ;;  %s166_s6 = scalar_lea.vmem (!%p147_p9), [#allocation2], %s647_s4 }
  0x12   : > { %s304_s7 = sshll.u32 (!%p147_p9), %s166_s6, 4  ;;  %s656_s10 = scalar_lea.hbm (!%p147_p9), %s742_s2, %s413_s5  ;;  %s658_s7 = int_to_ptr.vmem [resolvable:$true] %s304_s7 }
  0x13   : > { %v270_v21 = vsub.s32 (!%p147_p9), %v267_v19, %v269_v20  ;;  %s172_s11 = scalar_lea.vmem (!%p147_p9), [#allocation4], %s647_s4  ;;  %s288_s19 = scalar_lea.sflag (!%p147_p9), [#allocation3], %s647_s4 }
  0x14   : > { %s663_s17 = sshll.u32 (!%p147_p9), %s172_s11, 4  ;;  %s471_s20 = scalar_lea.vmem (!%p147_p9), %s658_s7, 16  ;;  %s696_s17 = int_to_ptr.vmem [resolvable:$true] %s663_s17 }
  0x15   : > { %p472_p11 = scmp.ne.s32.totalorder (!%p147_p9), %s658_s7, %s471_s20 }
  0x17   : > { %s174_s24 = scalar_select %p173_p10, %s611_s16, 1 }
  0x18   : > { %p473_p12 = pnand %p472_p11, %p628_p5 }
  0x19   : > { %s417_s25 = smul.u32 40, %s174_s24  ;;  %s568_s24 = smov [#allocation2]  }
  0x1a   : > { %p474_p13 = pneg %p473_p12 }
  0x1b   : > { %s177_s28 = scalar_lea.vmem %s740_s0, %s417_s25  ;;  %s475_s25 = sshll.u32 %s568_s24, 4  ;;  %s476_s25 = int_to_ptr.vmem [resolvable:$false] %s475_s25 }
  0x1c   : > { %v463_v1 = vld [vmem:[%s177_s28 + $0x4] ss:$8 sps:$4 sm:$0xff]   ;;  %v465_v2 = vld [vmem:[%s177_s28] ss:$8 sps:$4 sm:$0xff]   ;;  %v466_v3 = vld [vmem:[%s177_s28 + $0x14] ss:$8 sps:$4 sm:$0xff]   ;;  %p478_p0 = scmp.lt.s32.totalorder %s658_s7, %s476_s25 }
  0x1d   : > { %221 = vmatprep.subr.bf16.mxu0 %v463_v1  ;;  %v184_v4 = vld [vmem:[%s177_s28 + $0x20] sm:$0x33]  ;;  %v468_v5 = vld [vmem:[%s177_s28 + $0x10] ss:$8 sps:$4 sm:$0xff]   ;;  %s477_s26 = scalar_lea.vmem %s476_s25, 32 }
  0x1e   : > { %222 = vmatpush1.bf16.msra.mxu0 %v465_v2  ;;  %v410_v6 = vcombine.high %v184_v4, %v184_v4  ;;  %v409_v7 = vcombine.low %v184_v4, %v184_v4  ;;  %p479_p1 = scmp.lt.s32.totalorder %s477_s26, %s471_s20 }
  0x1f   : > { %223 = vmatprep.subr.bf16.mxu0 %v466_v3 }
  0x20   : > { %v216_v8 = vsel %vm214_vm0, %v409_v7, 0  ;;  %p480_p2 = por %p479_p1, %p478_p0 }
  0x22   : > { %224 = vmatpush1.bf16.msra.mxu0 %v468_v5  ;;  %p481_p3 = pnand %p480_p2, %p474_p13 }
  0x23   : > { %411 = vmatprep.subr.msk.bf16.mxu0 %vm214_vm0, %v410_v6 }
  0x26   : > { %226 = vmatpush1.bf16.msra.mxu0 %v216_v8 }
  0x29   : > { %412 = vmatmul.mubr.msk.bf16.vlgmr.msra.gmra.mrb[0].mxu0 %vm210_vm1, %v179_v9 }
  0xfc   : > { %v255_v10 = vpop.f32.mrb[0].mxu0 }
  0xfd   : > { %v275_v11 = vmul.f32 %v255_v10, %v255_v10  ;;  %v257_v12 = vpop.f32.mrb[1].mxu0 }
  0xfe   : > { %v276_v13 = vmul.f32 %v257_v12, %v257_v12  ;;  %v259_v14 = vpop.f32.mrb[2].mxu0  ;;  %v262_v15 = vadd.f32 %v257_v12, %v255_v10 }
  0xff   : > { %v260_v16 = vpop.f32.mrb[3].mxu0 }
 0x100   : > { %263 = vadd.xlane.f32.xlu0 %v262_v15  ;;  %v277_v17 = vadd.f32 %v276_v13, %v275_v11 }
 0x104   : > { %278 = vadd.xlane.f32.xlu0 %v277_v17 }
 0x18d   : > { %v264_v22 = vpop.xlane.xlu0 %263 }
 0x18e   : > { %v271_v23 = vrot.slane %v264_v22, %v270_v21 }
 0x190   : > { %274 = vst.msk [vmem:[%s166_s6] sm:$0x1] %vm273_vm2, %v271_v23 }
 0x191   : > { %v279_v24 = vpop.xlane.xlu0 %278 }
 0x192   : > { %484 = shalt.err (!%p481_p3)
}
 0x193   : > { %s485_s27 = scalar_lea.hbm %s656_s10, 16  ;;  %s489_s30 = scalar_lea.hbm %s742_s2, 32 }
 0x194   : > { %p486_p4 = scmp.ne.s32.totalorder %s656_s10, %s485_s27  ;;  %p490_p9 = scmp.lt.u32.totalorder %s656_s10, %s742_s2 }
 0x195   : > { %p491_p10 = scmp.lt.u32.totalorder %s489_s30, %s485_s27  ;;  %p493_p12 = scmp.lt.u32.totalorder %s485_s27, %s656_s10 }
 0x196   : > { %p487_p7 = pnand %p486_p4, %p628_p5 }
 0x197   : > { %p492_p11 = por %p491_p10, %p490_p9 }
 0x198   : > { %p488_p8 = pneg %p487_p7 }
 0x199   : > { %p494_p13 = por %p493_p12, %p492_p11 }
 0x19b   : > { %p495_p0 = pnand %p494_p13, %p488_p8 }
 0x19d   : > { %498 = shalt.err (!%p495_p0)
}
 0x19e   : > { %418 = dma.vmem_to_hbm [thread:$0]  (%p628_p5), %s658_s7, 16, %s656_s10, %s288_s19   ;;  %v284_v25 = vrot.slane %v279_v24, %v270_v21 }
 0x19f   : > { %s693_s24 = scalar_lea.hbm %s743_s3, %s413_s5  ;;  %s292_s25 = scalar_lea.sflag [#allocation5], %s647_s4 }
 0x1a0   : > { %286 = vst.msk [vmem:[%s172_s11] sm:$0x1] %vm273_vm2, %v284_v25  ;;  %s499_s26 = scalar_lea.vmem %s696_s17, 16  ;;  %s569_s16 = smov [#allocation4]  }
 0x1a1   : > { %p500_p1 = scmp.ne.s32.totalorder %s696_s17, %s499_s26  ;;  %s503_s7 = sshll.u32 %s569_s16, 4  ;;  %s504_s7 = int_to_ptr.vmem [resolvable:$false] %s503_s7 }
 0x1a2   : > { %s505_s10 = scalar_lea.vmem %s504_s7, 32  ;;  %p506_p4 = scmp.lt.s32.totalorder %s696_s17, %s504_s7 }
 0x1a3   : > { %p501_p2 = pnand %p500_p1, %p628_p5  ;;  %p507_p7 = scmp.lt.s32.totalorder %s505_s10, %s499_s26 }
 0x1a5   : > { %p502_p3 = pneg %p501_p2  ;;  %p508_p8 = por %p507_p7, %p506_p4 }
 0x1a7   : > { %p509_p9 = pnand %p508_p8, %p502_p3 }
 0x1a9   : > { %512 = shalt.err (!%p509_p9)
}
 0x1aa   : > { %s513_s4 = scalar_lea.hbm %s693_s24, 16  ;;  %s517_s19 = scalar_lea.hbm %s743_s3, 32 }
 0x1ab   : > { %p514_p10 = scmp.ne.s32.totalorder %s693_s24, %s513_s4  ;;  %p518_p13 = scmp.lt.u32.totalorder %s693_s24, %s743_s3 }
 0x1ac   : > { %p519_p0 = scmp.lt.u32.totalorder %s517_s19, %s513_s4  ;;  %p521_p2 = scmp.lt.u32.totalorder %s513_s4, %s693_s24 }
 0x1ad   : > { %p515_p11 = pnand %p514_p10, %p628_p5 }
 0x1ae   : > { %p520_p1 = por %p519_p0, %p518_p13 }
 0x1af   : > { %p516_p12 = pneg %p515_p11 }
 0x1b0   : > { %p522_p3 = por %p521_p2, %p520_p1 }
 0x1b2   : > { %p523_p4 = pnand %p522_p3, %p516_p12 }
 0x1b4   : > { %526 = shalt.err (!%p523_p4)
}
 0x1b5   : > { %419 = dma.vmem_to_hbm [thread:$0]  (%p628_p5), %s696_s17, 16, %s693_s24, %s292_s25  }
 0x1b6 PF: > { %p429_p7 = scmp.ge.s32.totalorder %s565_s15, 2  ;;  %s329_s29 = sand.u32 1, %s553_s12  }
 0x1b7   : > { %s330_s30 = scalar_lea.sflag [#allocation3], %s329_s29 }
 0x1b8   : > { %p423_p8 = pnand %p429_p7, %p632_p6 }
 0x1ba   : > { %544 = dma.done.wait (!%p423_p8), %s330_s30, 16  }
 0x1bb   : > { %546 = vsyncadd (!%p423_p8), %s330_s30, 4294967280  ;;  %s338_s6 = scalar_lea.sflag [#allocation5], %s329_s29 }
 0x1bc   : > { %548 = dma.done.wait (!%p423_p8), %s338_s6, 16  }
 0x1bd   : > { %550 = vsyncadd (!%p423_p8), %s338_s6, 4294967280  ;;  %p17_p5 = scmp.ge.s32.totalorder %s615_s18, 4   ;;  %s746_s12 = smov %s557_s13 }
 0x1be   : > { %s747_s13 = smov %s561_s14  ;;  %s748_s14 = smov %s626_s21 }
 0x1bf   : > { %s749_s15 = smov %s615_s18  ;;  %19 = sbr.rel (!%p17_p5) target bundleno = 5 (0x5), region = 80 }
 0x1c6   :  { %342 = vsyncpa [#allocation3], 1 }
 0x1c7   :  { %344 = vsyncpa [#allocation3 + $0x1], 1 }
 0x1c8   :  { %345 = vsyncpa [#allocation5], 1 }
 0x1c9   :  { %347 = vsyncpa [#allocation5 + $0x1], 1 }

</bundles_post_ra>
